<compile_context>
chip_gen: v6e
topology: v6e:2x2x1
jax: 0.10.0
libtpu: 0.0.40
codegen_flags: <defaults>
</compile_context>

<pallas_src>
import jax
import jax.numpy as jnp
from jax.experimental import pallas as pl
from jax.experimental.pallas import tpu as pltpu


def _label_predictor_kernel(feat_ref, w_ref, b_ref, out_ref):
    # feat_ref: (TB, nz) VMEM (f32 or bf16)   w_ref: (1, nz) VMEM f32
    # b_ref:    (1,) SMEM f32                 out_ref: (1, TB) VMEM f32 (lane-dense)
    feat = feat_ref[...].astype(jnp.float32)          # in-kernel upcast for bf16 feat
    # (1, nz) . (TB, nz)^T -> (1, TB): lane-dense logits row on the MXU.
    # f32 accumulation + HIGHEST precision keeps numerics at the 1e-5 level vs
    # the torch reference despite the different summation order.
    logits = jax.lax.dot_general(
        w_ref[...], feat,
        dimension_numbers=(((1,), (1,)), ((), ())),
        preferred_element_type=jnp.float32,
        precision=jax.lax.Precision.HIGHEST,
    )
    logits = logits + b_ref[0]                        # scalar-broadcast add from SMEM
    out_ref[...] = jax.nn.sigmoid(logits)


def _round_up(x, m):
    return (x + m - 1) // m * m


def _choose_batch_tile(batch, block_b):
    """Pick the batch tile.  Multi-tile runs need TB to be a multiple of 128
    (the lane dim of the (1, TB) output block); a single tile may equal the raw
    batch size (block dims == array dims is always legal)."""
    if batch <= 256:
        return batch
    # Keep the grid at >= 2 steps so ("parallel",) can shard tiles across both
    # TensorCores on v7x instead of letting block_b swallow the whole batch.
    half = _round_up(-(-batch // 2), 128)
    return max(128, min(_round_up(block_b, 128), half))


def label_predictor(feat, weight, bias, *, block_b=4096, min_kernel_batch=1024):
    """sigmoid(feat @ weight.T + bias).

    feat:   (B, nz)  f32 or bf16
    weight: (1, nz)  (torch nn.Linear layout)
    bias:   (1,)
    returns (B, 1) f32
    """
    B, nz = feat.shape
    w = weight.astype(jnp.float32).reshape(1, nz)
    b = bias.astype(jnp.float32).reshape(1)

    if B < min_kernel_batch:
        # Small-batch bypass: a fused XLA GEMV is strictly faster than any
        # pallas_call at the module's native sizes (B ~ 2).
        logits = jnp.dot(feat.astype(jnp.float32), w.T,
                         precision=jax.lax.Precision.HIGHEST) + b
        return jax.nn.sigmoid(logits)

    tb = _choose_batch_tile(B, block_b)
    grid = pl.cdiv(B, tb)

    # Real VMEM budget: 2 double-buffered feat tiles of TB x lane-padded nz.
    # Default (tb=4096, f32, nz padded to 128) -> 4 MiB total, well inside the
    # scoped-VMEM defaults of v5e/v6e/v7x; only override the limit when needed.
    lane_nz = _round_up(nz, 128)
    feat_tile_bytes = 2 * tb * lane_nz * jnp.dtype(feat.dtype).itemsize
    vmem_limit = int(2 * feat_tile_bytes) if feat_tile_bytes > (12 << 20) else None

    out_row = pl.pallas_call(
        _label_predictor_kernel,
        out_shape=jax.ShapeDtypeStruct((1, B), jnp.float32),
        grid_spec=pltpu.PrefetchScalarGridSpec(
            num_scalar_prefetch=0,
            grid=(grid,),
            in_specs=[
                # feat: streamed (TB, nz) tiles along the batch grid axis; the
                # ragged last tile is clipped by Pallas (no wrapper pad copy).
                pl.BlockSpec((tb, nz), lambda i: (i, 0)),
                # weight: lane-dense (1, nz) row, resident across all steps.
                pl.BlockSpec((1, nz), lambda i: (0, 0)),
                # bias: single scalar in SMEM (no padded VMEM tile).
                pl.BlockSpec(memory_space=pltpu.MemorySpace.SMEM),
            ],
            # Lane-dense output: batch rides on the 128-lane axis.
            out_specs=pl.BlockSpec((1, tb), lambda i: (0, i)),
        ),
        compiler_params=pltpu.CompilerParams(
            dimension_semantics=("parallel",),
            vmem_limit_bytes=vmem_limit,
        ),
    )(feat, w, b)

    # (1, B) -> (B, 1): contiguous reshape, no data movement.
    return out_row.reshape(B, 1)


def init_params(key, nz_feat):
    # Mimic nn.Linear default init: U(-1/sqrt(fan_in), 1/sqrt(fan_in)).
    kw, kb = jax.random.split(key)
    bound = 1.0 / jnp.sqrt(jnp.float32(nz_feat))
    w = jax.random.uniform(kw, (1, nz_feat), jnp.float32, -bound, bound)  # torch (out, in)
    b = jax.random.uniform(kb, (1,), jnp.float32, -bound, bound)
    return w, b


def _reference(feat, w, b):
    logits = jnp.dot(feat.astype(jnp.float32), w.T,
                     precision=jax.lax.Precision.HIGHEST) + b
    return jax.nn.sigmoid(logits)


if __name__ == "__main__":
    key = jax.random.PRNGKey(0)
    k_feat, k_param, k_big = jax.random.split(key, 3)

    # Small shape consistent with the module (batch=2, nz_feat=32).
    B, nz_feat = 2, 32
    feat = jax.random.normal(k_feat, (B, nz_feat), jnp.float32)
    w, b = init_params(k_param, nz_feat)   # w: (1, nz) torch layout, b: (1,)

    # 1) Native tiny batch -> small-batch bypass (fused XLA GEMV).
    out = jax.block_until_ready(label_predictor(feat, w, b))
    assert out.shape == (B, 1)
    assert jnp.allclose(out, _reference(feat, w, b), atol=1e-5, rtol=1e-5)

    # 2) Same tiny batch forced through the Pallas kernel (single-block path).
    out_k = jax.block_until_ready(label_predictor(feat, w, b, min_kernel_batch=0))
    assert out_k.shape == (B, 1)
    assert jnp.allclose(out_k, _reference(feat, w, b), atol=1e-5, rtol=1e-5)

    # 3) Larger, non-tile-multiple batch: multi-step grid, ragged last tile,
    #    megacore-parallel tiling, lane-dense writeback.
    B2 = 3000
    feat2 = jax.random.normal(k_big, (B2, nz_feat), jnp.float32)
    out2 = jax.block_until_ready(label_predictor(feat2, w, b))
    assert out2.shape == (B2, 1)
    assert jnp.allclose(out2, _reference(feat2, w, b), atol=1e-5, rtol=1e-5)

    # 4) bf16 feat storage path (halves the dominant HBM read); f32 accumulate/out.
    feat2_bf16 = feat2.astype(jnp.bfloat16)
    out3 = jax.block_until_ready(label_predictor(feat2_bf16, w, b))
    assert out3.shape == (B2, 1)
    assert jnp.allclose(out3, _reference(feat2_bf16, w, b), atol=1e-5, rtol=1e-5)

    print("KERNEL_OK")
</pallas_src>

<mosaic_0001>
module attributes {stable_mosaic.version = 11 : i64} {
  func.func @_label_predictor_kernel(%arg0: i32, %arg1: memref<2x32xf32, #tpu.memory_space<vmem>>, %arg2: memref<1x32xf32, #tpu.memory_space<vmem>>, %arg3: memref<1xf32, #tpu.memory_space<smem>>, %arg4: memref<1x2xf32, #tpu.memory_space<vmem>>) attributes {dimension_semantics = [#tpu.dimension_semantics<parallel>], iteration_bounds = array<i64: 1>, scalar_prefetch = 0 : i64, scratch_operands = 0 : i64, tpu.core_type = #tpu.core_type<tc>, window_params = [{transform_indices = @transform_0, window_bounds = array<i64: 2, 32>}, {pipeline_mode = #tpu.pipeline_mode<synchronous>, transform_indices = @transform_1, window_bounds = array<i64: 1, 32>}, {transform_indices = @transform_2, window_bounds = array<i64: 1>}, {transform_indices = @transform_3, window_bounds = array<i64: 1, 2>}]} {
    %c0 = arith.constant 0 : index
    %c0_0 = arith.constant 0 : index
    %0 = vector.load %arg1[%c0, %c0_0] : memref<2x32xf32, #tpu.memory_space<vmem>>, vector<2x32xf32>
    %c0_1 = arith.constant 0 : index
    %c0_2 = arith.constant 0 : index
    %1 = vector.load %arg2[%c0_1, %c0_2] : memref<1x32xf32, #tpu.memory_space<vmem>>, vector<1x32xf32>
    %cst = arith.constant dense<0.000000e+00> : vector<1x2xf32>
    %2 = tpu.matmul %1, %0, %cst {dimension_numbers = #tpu.dot_dimension_numbers<[1], [1], [0], [0], [0, 0, 1, 0], [], []>, precision = #tpu.contract_precision<fp32>} : vector<1x32xf32>, vector<2x32xf32>, vector<1x2xf32> -> vector<1x2xf32>
    %c0_3 = arith.constant 0 : index
    %3 = memref.load %arg3[%c0_3] : memref<1xf32, #tpu.memory_space<smem>>
    %4 = vector.broadcast %3 : f32 to vector<1x2xf32>
    %5 = arith.addf %2, %4 : vector<1x2xf32>
    %6 = arith.negf %5 : vector<1x2xf32>
    %7 = math.exp %6 : vector<1x2xf32>
    %cst_4 = arith.constant 1.000000e+00 : f32
    %8 = vector.broadcast %cst_4 : f32 to vector<1x2xf32>
    %9 = arith.addf %8, %7 : vector<1x2xf32>
    %10 = arith.divf %8, %9 : vector<1x2xf32>
    %c0_5 = arith.constant 0 : index
    %c0_6 = arith.constant 0 : index
    %11 = vector.load %arg4[%c0_5, %c0_6] : memref<1x2xf32, #tpu.memory_space<vmem>>, vector<1x2xf32>
    tpu.vector_store %arg4[%c0_5, %c0_6], %10 {strides = array<i32>} : memref<1x2xf32, #tpu.memory_space<vmem>>, vector<1x2xf32>,
    return
  }
  func.func @transform_0(%arg0: i32) -> (i32, i32) {
    %c0_i32 = arith.constant 0 : i32
    %c0_i32_0 = arith.constant 0 : i32
    return %arg0, %c0_i32 : i32, i32
  }
  func.func @transform_1(%arg0: i32) -> (i32, i32) {
    %c0_i32 = arith.constant 0 : i32
    %c0_i32_0 = arith.constant 0 : i32
    %c0_i32_1 = arith.constant 0 : i32
    return %c0_i32, %c0_i32_0 : i32, i32
  }
  func.func @transform_2(%arg0: i32) -> i32 {
    %c0_i32 = arith.constant 0 : i32
    %c0_i32_0 = arith.constant 0 : i32
    return %c0_i32 : i32
  }
  func.func @transform_3(%arg0: i32) -> (i32, i32) {
    %c0_i32 = arith.constant 0 : i32
    %c0_i32_0 = arith.constant 0 : i32
    return %c0_i32, %arg0 : i32, i32
  }
}

</mosaic_0001>

<bundles_post_ra>
// kernel: tpu_custom_call.1
= control target key start
LH: loop header
LB: loop body
LE: loop exit
PB: predicated region body
PF: predicated region fallthrough
CT: control target
= control target key end

     0   :  { %vm20_vm0 = vcmask 261120   ;;  %v567_v1 = vmov 0.0   ;;  %vm568_vm1 = vmmov 0   ;;  %s608_s0 = inlined_call_operand.vmem [shape: f32[2,32], index: 0, kind: input, shape index: {}]   ;;  %s609_s1 = inlined_call_operand.vmem [shape: f32[1,32], index: 1, kind: input, shape index: {}]   ;;  %s610_s2 = inlined_call_operand.<no memory space> [shape: f32[1], index: 2, kind: input, shape index: {}]   ;;  %s611_s3 = inlined_call_operand.hbm [shape: f32[1,2], index: 3, kind: output, shape index: {}]  }
   0x1   :  { %v16_v0 = vld [vmem:[%s608_s0] sm:$0x3]  ;;  %508 = vmatprep.subr.mxu0 %v567_v1  ;;  %510 = vmatprep.mubr.msk.f32.mxu0 %vm568_vm1, %v567_v1 }
   0x2   :  { %v25_v2 = vsel %vm20_vm0, %v16_v0, 0  ;;  %v17_v3 = vld [vmem:[%s609_s1] sm:$0x1] }
   0x3   :  { %9 = vsyncpa [#allocation4], 0  ;;  %v58_v4 = vand.u32 4294901760, %v25_v2  ;;  %513 = vmatprep.subr.mxu1 %v567_v1  ;;  %v22_v5 = vsel %vm20_vm0, %v17_v3, 0  ;;  %515 = vmatprep.mubr.msk.f32.mxu1 %vm568_vm1, %v567_v1  ;;  %v19_v15 = vstv %s610_s2  ;;  %s569_s2 = smov [#allocation3]   ;;  %vm479_vm2 = vcmask 8192  }
   0x4   :  { %v93_v6 = vand.u32 4294901760, %v22_v5  ;;  %s487_s16 = sshll.u32 %s569_s2, 4  ;;  %s488_s16 = int_to_ptr.vmem [resolvable:$true] %s487_s16 }
   0x5   :  { %509 = vmatpush3.xpose.msra.mxu0 %v58_v4  ;;  %v135_v7 = vsub.f32 %v25_v2, %v58_v4  ;;  %s545_s17 = scalar_lea.vmem %s488_s16, 16  ;;  %s549_s18 = scalar_lea.vmem %s488_s16, 32 }
   0x6   :  { %v94_v8 = vsub.f32 %v22_v5, %v93_v6  ;;  %518 = vmatprep.subr.mxu0 %v567_v1  ;;  %p546_p0 = scmp.ne.s32.totalorder %s488_s16, %s545_s17  ;;  %p550_p1 = scmp.lt.s32.totalorder %s488_s16, %s488_s16 }
   0x7   :  { %v136_v9 = vand.u32 4294901760, %v135_v7  ;;  %p551_p2 = scmp.lt.s32.totalorder %s549_s18, %s545_s17 }
   0x8   :  { %v95_v10 = vand.u32 4294901760, %v94_v8 }
   0x9   :  { %v137_v11 = vsub.f32 %v135_v7, %v136_v9  ;;  %p552_p3 = por %p551_p2, %p550_p1 }
   0xa   :  { %v96_v12 = vsub.f32 %v94_v8, %v95_v10 }
   0xb   :  { %v138_v13 = vand.u32 4294901760, %v137_v11  ;;  %p553_p4 = pnand %p552_p3, %p546_p0 }
   0xc   :  { %v97_v14 = vand.u32 4294901760, %v96_v12 }
   0xd   :  { %514 = vmatpush3.xpose.msra.mxu1 %v138_v13 }
   0xe   :  { %511 = vmatmul.mubr.f32.vlgmr.msra.gmra.mxu0 %v97_v14  ;;  %523 = vmatprep.subr.mxu1 %v567_v1 }
   0xf   :  { %519 = vmatpush3.xpose.msra.mxu0 %v135_v7  ;;  %520 = vmatprep.mubr.msk.f32.mxu0 %vm568_vm1, %v567_v1 }
  0x10   :  { %516 = vmatmul.mubr.f32.vlgmr.msra.gmra.mxu1 %v93_v6  ;;  %528 = vmatprep.subr.mxu0 %v567_v1 }
  0x11   :  { %524 = vmatpush3.xpose.msra.mxu1 %v58_v4  ;;  %525 = vmatprep.mubr.msk.f32.mxu1 %vm568_vm1, %v567_v1 }
  0x12   :  { %521 = vmatmul.mubr.f32.vlgmr.msra.gmra.mxu0 %v94_v8  ;;  %533 = vmatprep.subr.mxu1 %v567_v1 }
  0x13   :  { %529 = vmatpush3.xpose.msra.mxu0 %v136_v9  ;;  %530 = vmatprep.mubr.msk.f32.mxu0 %vm568_vm1, %v567_v1 }
  0x14   :  { %526 = vmatmul.mubr.f32.vlgmr.msra.gmra.mxu1 %v95_v10 }
  0x15   :  { %534 = vmatpush3.xpose.msra.mxu1 %v58_v4  ;;  %535 = vmatprep.mubr.msk.f32.mxu1 %vm568_vm1, %v567_v1 }
  0x16   :  { %531 = vmatmul.mubr.f32.vlgmr.msra.gmra.mxu0 %v93_v6 }
  0x18   :  { %536 = vmatmul.mubr.f32.vlgmr.msra.gmra.mxu1 %v93_v6 }
  0xce   :  { %v99_v16 = vpop.f32.mrf.mxu0 }
  0xcf   :  { %v100_v17 = vadd.f32 %v99_v16, %v19_v15 }
  0xd0   :  { %v512_v18 = vpop.f32.mrf.mxu0  ;;  %v175_v19 = vpop.f32.mrf.mxu1 }
  0xd1   :  { %v176_v20 = vadd.f32 %v175_v19, %v100_v17 }
  0xd2   :  { %v249_v21 = vpop.f32.mrf.mxu0  ;;  %v517_v22 = vpop.f32.mrf.mxu1 }
  0xd3   :  { %v250_v23 = vadd.f32 %v249_v21, %v176_v20 }
  0xd4   :  { %v522_v24 = vpop.f32.mrf.mxu0  ;;  %v323_v25 = vpop.f32.mrf.mxu1 }
  0xd5   :  { %v324_v26 = vadd.f32 %v323_v25, %v250_v23 }
  0xd6   :  { %v397_v27 = vpop.f32.mrf.mxu0  ;;  %v527_v28 = vpop.f32.mrf.mxu1 }
  0xd7   :  { %v398_v29 = vadd.f32 %v397_v27, %v324_v26 }
  0xd8   :  { %v532_v30 = vpop.f32.mrf.mxu0  ;;  %v469_v31 = vpop.f32.mrf.mxu1 }
  0xd9   :  { %v470_v32 = vadd.f32 %v469_v31, %v398_v29 }
  0xda   :  { %v537_v33 = vpop.f32.mrf.mxu1 }
  0xdb   :  { %v495_v34 = vmul.f32 -1.442695, %v470_v32 }
  0xdd   :  { %541 = vpow2.f32 %v495_v34 }
  0xea   :  { %v542_v35 = vpop.eup %541 }
  0xeb   :  { %v476_v36 = vadd.f32 1.0, %v542_v35 }
  0xed   :  { %543 = vrcp.f32 %v476_v36 }
  0xfa   :  { %v544_v37 = vpop.eup %543 }
  0xfb   :  { %480 = vst.msk [vmem:[#allocation3] sm:$0x1] %vm479_vm2, %v544_v37 }
  0xfc   :  { %556 = shalt.err (!%p553_p4)
}
  0xfd   :  { %490 = dma.vmem_to_hbm [thread:$0]  %s488_s16, 16, %s611_s3, [#allocation4]  }
  0xfe   :  { %565 = dma.done.wait [#allocation4], 16  }
  0xff   :  { %566 = vsyncadd [#allocation4], 4294967280 }
 0x100   :  { %494 = vsyncpa [#allocation4], 1 }

</bundles_post_ra>
